<compile_context>
chip_gen: v5e
topology: v5e:2x2
jax: 0.10.0
libtpu: 0.0.40
codegen_flags: <defaults>
</compile_context>

<pallas_src>
import jax
import jax.numpy as jnp
from jax.experimental import pallas as pl
from jax.experimental.pallas import tpu as pltpu

LANE = 128          # TPU lane width
HIDDEN = 128        # Policy hidden width (fixed by the module)
MAX_TILE_B = 1024   # default batch tile for the pipelined path


def policy_mlp_kernel(x_ref, w1_ref, b1_ref, w2_ref, b2_ref, w3_ref, b3_ref, o_ref):
    """One batch tile of the 3-layer MLP.  All weights are VMEM-resident."""
    x = x_ref[...]          # (tile_b, K)   K = n_observations (tiny, e.g. 4)
    w1 = w1_ref[...]        # (K, H)

    # ---- layer1 on the VPU ---------------------------------------------------
    # A K=4 contraction would fill only 4/128 (v5e) or 4/256 (v6e/v7x) of the
    # MXU while paying the full push + result-FIFO drain; K unrolled
    # broadcast-MACs on (tile_b, H) vregs are cheaper.  Kept f32 (no bf16 VALU
    # on v5e).
    K = x.shape[1]
    acc = x[:, 0:1] * w1[0:1, :]
    for k in range(1, K):
        acc = acc + x[:, k:k + 1] * w1[k:k + 1, :]
    h1 = jnp.maximum(acc + b1_ref[...], 0.0)

    # ---- layer2 (128x128) on the MXU, f32 accumulation ------------------------
    h2 = jnp.dot(h1, w2_ref[...], preferred_element_type=jnp.float32) + b2_ref[...]
    h2 = jnp.maximum(h2, 0.0)

    # ---- layer3 on the MXU; w3/b3 were zero-padded to 128 lanes at init time
    # so the matmul uses a canonical 128-wide tile, but only the real
    # n_actions columns are written back (narrow HBM writeback).
    y = jnp.dot(h2, w3_ref[...], preferred_element_type=jnp.float32) + b3_ref[...]
    A = o_ref.shape[1]
    o_ref[...] = y[:, :A].astype(o_ref.dtype)


def _choose_tile_b(B, max_tile_b):
    """Largest multiple-of-128 tile <= max_tile_b, preferring an even number of
    grid steps so the 'parallel' batch axis splits across both v7x TCs."""
    for t in range(max_tile_b, LANE - 1, -LANE):
        if pl.cdiv(B, t) % 2 == 0:
            return t
    return max_tile_b


def policy_forward(x, params, *, max_tile_b=MAX_TILE_B):
    """x: (B, n_observations) f32.  Returns (B, n_actions) f32 Q-values."""
    w1, b1, w2, b2 = params["w1"], params["b1"], params["w2"], params["b2"]
    w3p, b3p = params["w3p"], params["b3p"]        # lane-padded once at init
    A = params["w3"].shape[1]
    B, K = x.shape
    H = w1.shape[1]

    args = (x, w1, b1, w2, b2, w3p, b3p)
    out_shape = jax.ShapeDtypeStruct((B, A), jnp.float32)

    # Advisory cost estimate: lets XLA overlap this small call with the rest
    # of the RL step.
    param_bytes = sum(int(a.size) * a.dtype.itemsize for a in args[1:])
    cost = pl.CostEstimate(
        flops=int(2 * B * (K * H + H * H + H * w3p.shape[1])),
        transcendentals=0,
        bytes_accessed=int(x.size) * 4 + int(B * A) * 4 + param_bytes,
    )

    if B <= max_tile_b:
        # Small batch (typical RL action selection): single-shot kernel, all
        # operands VMEM-resident (< ~1.5 MiB even at B=1024, well inside
        # v5e's 16 MiB default scoped VMEM) -- no grid-loop overhead.
        full = lambda a: pl.BlockSpec(a.shape, lambda: (0,) * a.ndim)
        return pl.pallas_call(
            policy_mlp_kernel,
            out_shape=out_shape,
            grid=(),
            in_specs=[full(a) for a in args],
            out_specs=pl.BlockSpec((B, A), lambda: (0, 0)),
            cost_estimate=cost,
        )(*args)

    # Large batch: pipelined batch-tiled grid.  Weights have constant index
    # maps (fetched once, stay resident); x / out stream over the batch axis
    # with double-buffered DMA.  cdiv grid + masked boundary tile handles any
    # B without a VMEM-resident fallback.
    tile_b = _choose_tile_b(B, max_tile_b)
    resident = lambda a: pl.BlockSpec(a.shape, lambda i: (0,) * a.ndim)
    grid_spec = pltpu.PrefetchScalarGridSpec(
        num_scalar_prefetch=0,
        grid=(pl.cdiv(B, tile_b),),
        in_specs=[pl.BlockSpec((tile_b, K), lambda i: (i, 0)),
                  resident(w1), resident(b1),
                  resident(w2), resident(b2),
                  resident(w3p), resident(b3p)],
        out_specs=pl.BlockSpec((tile_b, A), lambda i: (i, 0)),
    )
    return pl.pallas_call(
        policy_mlp_kernel,
        out_shape=out_shape,
        grid_spec=grid_spec,
        compiler_params=pltpu.CompilerParams(
            dimension_semantics=("parallel",)),
        cost_estimate=cost,
    )(*args)


def init_policy_params(key, n_observations, n_actions, hidden=HIDDEN):
    """Mimics nn.Linear's U(-1/sqrt(fan_in), 1/sqrt(fan_in)) init.
    Also stores layer3's weight/bias zero-padded to a full 128-lane tile
    ("w3p"/"b3p"), prepared ONCE here instead of per forward call."""
    ks = jax.random.split(key, 6)

    def linear(kw, kb, fan_in, fan_out):
        bound = 1.0 / jnp.sqrt(jnp.float32(fan_in))
        w = jax.random.uniform(kw, (fan_in, fan_out), jnp.float32, -bound, bound)
        b = jax.random.uniform(kb, (1, fan_out), jnp.float32, -bound, bound)
        return w, b

    w1, b1 = linear(ks[0], ks[1], n_observations, hidden)
    w2, b2 = linear(ks[2], ks[3], hidden, hidden)
    w3, b3 = linear(ks[4], ks[5], hidden, n_actions)

    a_pad = max(LANE, ((n_actions + LANE - 1) // LANE) * LANE)
    w3p = jnp.pad(w3, ((0, 0), (0, a_pad - n_actions)))
    b3p = jnp.pad(b3, ((0, 0), (0, a_pad - n_actions)))
    return {"w1": w1, "b1": b1, "w2": w2, "b2": b2,
            "w3": w3, "b3": b3, "w3p": w3p, "b3p": b3p}


def policy_forward_ref(x, p):
    h1 = jnp.maximum(x @ p["w1"] + p["b1"], 0.0)
    h2 = jnp.maximum(h1 @ p["w2"] + p["b2"], 0.0)
    return h2 @ p["w3"] + p["b3"]


if __name__ == "__main__":
    key = jax.random.PRNGKey(0)
    k_params, k_x1, k_x2 = jax.random.split(key, 3)

    n_observations = 4   # e.g. CartPole observation dim
    n_actions = 2        # e.g. CartPole action dim
    params = init_policy_params(k_params, n_observations, n_actions)

    # 1) Small batch -> single-shot (grid=()) path, typical action selection.
    x_small = jax.random.normal(k_x1, (8, n_observations), jnp.float32)
    out_small = jax.block_until_ready(policy_forward(x_small, params))
    ref_small = policy_forward_ref(x_small, params)
    assert out_small.shape == (8, n_actions)
    assert jnp.allclose(out_small, ref_small, atol=1e-4, rtol=1e-4)

    # 2) Pipelined batch-tiled path with a cdiv grid and a partial final tile
    #    (exercised at a small shape by shrinking max_tile_b to 128).
    x_big = jax.random.normal(k_x2, (300, n_observations), jnp.float32)
    out_big = jax.block_until_ready(policy_forward(x_big, params, max_tile_b=128))
    ref_big = policy_forward_ref(x_big, params)
    assert out_big.shape == (300, n_actions)
    assert jnp.allclose(out_big, ref_big, atol=1e-4, rtol=1e-4)

    print("KERNEL_OK")
</pallas_src>

<mosaic_0001>
module attributes {stable_mosaic.version = 11 : i64} {
  func.func @policy_mlp_kernel(%arg0: memref<8x4xf32, #tpu.memory_space<vmem>>, %arg1: memref<4x128xf32, #tpu.memory_space<vmem>>, %arg2: memref<1x128xf32, #tpu.memory_space<vmem>>, %arg3: memref<128x128xf32, #tpu.memory_space<vmem>>, %arg4: memref<1x128xf32, #tpu.memory_space<vmem>>, %arg5: memref<128x128xf32, #tpu.memory_space<vmem>>, %arg6: memref<1x128xf32, #tpu.memory_space<vmem>>, %arg7: memref<8x2xf32, #tpu.memory_space<vmem>>) attributes {dimension_semantics = [], scalar_prefetch = 0 : i64, scratch_operands = 0 : i64, tpu.core_type = #tpu.core_type<tc>} {
    %c0 = arith.constant 0 : index
    %c0_0 = arith.constant 0 : index
    %0 = vector.load %arg0[%c0, %c0_0] : memref<8x4xf32, #tpu.memory_space<vmem>>, vector<8x4xf32>
    %c0_1 = arith.constant 0 : index
    %c0_2 = arith.constant 0 : index
    %1 = vector.load %arg1[%c0_1, %c0_2] : memref<4x128xf32, #tpu.memory_space<vmem>>, vector<4x128xf32>
    %2 = vector.extract_strided_slice %0 {offsets = [0, 0], sizes = [8, 1], strides = [1, 1]} : vector<8x4xf32> to vector<8x1xf32>
    %3 = vector.extract_strided_slice %1 {offsets = [0, 0], sizes = [1, 128], strides = [1, 1]} : vector<4x128xf32> to vector<1x128xf32>
    %4 = vector.broadcast %2 : vector<8x1xf32> to vector<8x128xf32>
    %5 = vector.broadcast %3 : vector<1x128xf32> to vector<8x128xf32>
    %6 = arith.mulf %4, %5 : vector<8x128xf32>
    %7 = vector.extract_strided_slice %0 {offsets = [0, 1], sizes = [8, 1], strides = [1, 1]} : vector<8x4xf32> to vector<8x1xf32>
    %8 = vector.extract_strided_slice %1 {offsets = [1, 0], sizes = [1, 128], strides = [1, 1]} : vector<4x128xf32> to vector<1x128xf32>
    %9 = vector.broadcast %7 : vector<8x1xf32> to vector<8x128xf32>
    %10 = vector.broadcast %8 : vector<1x128xf32> to vector<8x128xf32>
    %11 = arith.mulf %9, %10 : vector<8x128xf32>
    %12 = arith.addf %6, %11 : vector<8x128xf32>
    %13 = vector.extract_strided_slice %0 {offsets = [0, 2], sizes = [8, 1], strides = [1, 1]} : vector<8x4xf32> to vector<8x1xf32>
    %14 = vector.extract_strided_slice %1 {offsets = [2, 0], sizes = [1, 128], strides = [1, 1]} : vector<4x128xf32> to vector<1x128xf32>
    %15 = vector.broadcast %13 : vector<8x1xf32> to vector<8x128xf32>
    %16 = vector.broadcast %14 : vector<1x128xf32> to vector<8x128xf32>
    %17 = arith.mulf %15, %16 : vector<8x128xf32>
    %18 = arith.addf %12, %17 : vector<8x128xf32>
    %19 = vector.extract_strided_slice %0 {offsets = [0, 3], sizes = [8, 1], strides = [1, 1]} : vector<8x4xf32> to vector<8x1xf32>
    %20 = vector.extract_strided_slice %1 {offsets = [3, 0], sizes = [1, 128], strides = [1, 1]} : vector<4x128xf32> to vector<1x128xf32>
    %21 = vector.broadcast %19 : vector<8x1xf32> to vector<8x128xf32>
    %22 = vector.broadcast %20 : vector<1x128xf32> to vector<8x128xf32>
    %23 = arith.mulf %21, %22 : vector<8x128xf32>
    %24 = arith.addf %18, %23 : vector<8x128xf32>
    %c0_3 = arith.constant 0 : index
    %c0_4 = arith.constant 0 : index
    %25 = vector.load %arg2[%c0_3, %c0_4] : memref<1x128xf32, #tpu.memory_space<vmem>>, vector<1x128xf32>
    %26 = vector.broadcast %25 : vector<1x128xf32> to vector<8x128xf32>
    %27 = arith.addf %24, %26 : vector<8x128xf32>
    %cst = arith.constant 0.000000e+00 : f32
    %28 = vector.broadcast %cst : f32 to vector<8x128xf32>
    %29 = arith.maximumf %27, %28 : vector<8x128xf32>
    %c0_5 = arith.constant 0 : index
    %c0_6 = arith.constant 0 : index
    %30 = vector.load %arg3[%c0_5, %c0_6] : memref<128x128xf32, #tpu.memory_space<vmem>>, vector<128x128xf32>
    %cst_7 = arith.constant dense<0.000000e+00> : vector<8x128xf32>
    %31 = tpu.matmul %29, %30, %cst_7 {dimension_numbers = #tpu.dot_dimension_numbers<[1], [0], [0], [1], [0, 0, 1, 1], [], []>} : vector<8x128xf32>, vector<128x128xf32>, vector<8x128xf32> -> vector<8x128xf32>
    %c0_8 = arith.constant 0 : index
    %c0_9 = arith.constant 0 : index
    %32 = vector.load %arg4[%c0_8, %c0_9] : memref<1x128xf32, #tpu.memory_space<vmem>>, vector<1x128xf32>
    %33 = vector.broadcast %32 : vector<1x128xf32> to vector<8x128xf32>
    %34 = arith.addf %31, %33 : vector<8x128xf32>
    %cst_10 = arith.constant 0.000000e+00 : f32
    %35 = vector.broadcast %cst_10 : f32 to vector<8x128xf32>
    %36 = arith.maximumf %34, %35 : vector<8x128xf32>
    %c0_11 = arith.constant 0 : index
    %c0_12 = arith.constant 0 : index
    %37 = vector.load %arg5[%c0_11, %c0_12] : memref<128x128xf32, #tpu.memory_space<vmem>>, vector<128x128xf32>
    %cst_13 = arith.constant dense<0.000000e+00> : vector<8x128xf32>
    %38 = tpu.matmul %36, %37, %cst_13 {dimension_numbers = #tpu.dot_dimension_numbers<[1], [0], [0], [1], [0, 0, 1, 1], [], []>} : vector<8x128xf32>, vector<128x128xf32>, vector<8x128xf32> -> vector<8x128xf32>
    %c0_14 = arith.constant 0 : index
    %c0_15 = arith.constant 0 : index
    %39 = vector.load %arg6[%c0_14, %c0_15] : memref<1x128xf32, #tpu.memory_space<vmem>>, vector<1x128xf32>
    %40 = vector.broadcast %39 : vector<1x128xf32> to vector<8x128xf32>
    %41 = arith.addf %38, %40 : vector<8x128xf32>
    %42 = vector.extract_strided_slice %41 {offsets = [0, 0], sizes = [8, 2], strides = [1, 1]} : vector<8x128xf32> to vector<8x2xf32>
    %c0_16 = arith.constant 0 : index
    %c0_17 = arith.constant 0 : index
    %43 = vector.load %arg7[%c0_16, %c0_17] : memref<8x2xf32, #tpu.memory_space<vmem>>, vector<8x2xf32>
    tpu.vector_store %arg7[%c0_16, %c0_17], %42 {strides = array<i32>} : memref<8x2xf32, #tpu.memory_space<vmem>>, vector<8x2xf32>,
    return
  }
}

</mosaic_0001>

<bundles_post_ra>
// kernel: tpu_custom_call.1
= control target key start
LH: loop header
LB: loop body
LE: loop exit
PB: predicated region body
PF: predicated region fallthrough
CT: control target
= control target key end

     0   :  { %12 = vsyncpa [#allocation3], 0  ;;  %s323_s0 = inlined_call_operand.vmem [shape: f32[8,4], index: 0, kind: input, shape index: {}]   ;;  %s324_s1 = inlined_call_operand.vmem [shape: f32[4,128], index: 1, kind: input, shape index: {}]   ;;  %s325_s2 = inlined_call_operand.vmem [shape: f32[1,128], index: 2, kind: input, shape index: {}]   ;;  %s326_s3 = inlined_call_operand.hbm [shape: f32[128,128], index: 3, kind: input, shape index: {}]   ;;  %s327_s4 = inlined_call_operand.vmem [shape: f32[1,128], index: 4, kind: input, shape index: {}]   ;;  %s328_s5 = inlined_call_operand.hbm [shape: f32[128,128], index: 5, kind: input, shape index: {}]   ;;  %s329_s6 = inlined_call_operand.vmem [shape: f32[1,128], index: 6, kind: input, shape index: {}]   ;;  %s330_s7 = inlined_call_operand.vmem [shape: f32[8,2], index: 7, kind: output, shape index: {}]  }
   0x1   :  { %s24_s26 = sshll.u32 %s326_s3, 4  ;;  %s25_s26 = int_to_ptr.hbm [resolvable:$true] %s24_s26 }
   0x2   :  { %13 = vsyncpa [#allocation5], 0  ;;  %s251_s27 = smov [#allocation2]   ;;  %s39_s8 = sshll.u32 %s328_s5, 4  ;;  %s40_s8 = int_to_ptr.hbm [resolvable:$true] %s39_s8 }
   0x3   :  { %s26_s28 = sshll.u32 %s251_s27, 4  ;;  %s252_s9 = smov 128   ;;  %s27_s28 = int_to_ptr.vmem [resolvable:$true] %s26_s28 }
   0x4   :  { %s253_s10 = smov 8   ;;  %s254_s11 = smov [#allocation4]  }
   0x5   :  { %32 = dma.hbm_to_vmem [thread:$0]  %s25_s26, 2048, %s27_s28, [#allocation3], %s252_s9, %s252_s9, %s253_s10  }
   0x6   :  { %s41_s12 = sshll.u32 %s254_s11, 4  ;;  %s42_s12 = int_to_ptr.vmem [resolvable:$true] %s41_s12 }
   0x7   :  { %47 = dma.hbm_to_vmem [thread:$0]  %s40_s8, 2048, %s42_s12, [#allocation5], %s252_s9, %s252_s9, %s253_s10  }
   0x8   :  { %247 = dma.done.wait [#allocation3], 2048  }
   0x9   :  { %248 = vsyncadd [#allocation3], 4294965248 }
   0xa   :  { %249 = dma.done.wait [#allocation5], 2048  }
   0xb   :  { %250 = vsyncadd [#allocation5], 4294965248  ;;  %v255_v0 = vmov 0   ;;  %v256_v1 = vmov 2   ;;  %v58_v2 = vld [vmem:[%s323_s0] sm:$0xff]  ;;  %v109_v3 = vld [vmem:[#allocation2 + $0x78] sm:$0xff] }
   0xc   :  { %191 = vset.pattern.permute.xlu0 %v255_v0  ;;  %193 = vset.pattern.permute.xlu1 %v256_v1  ;;  %v108_v4 = vld [vmem:[#allocation2 + $0x70] sm:$0xff]  ;;  %v107_v5 = vld [vmem:[#allocation2 + $0x68] sm:$0xff]  ;;  %v106_v6 = vld [vmem:[#allocation2 + $0x60] sm:$0xff]  ;;  %v257_v8 = vmov 1   ;;  %v258_v9 = vmov 3   ;;  %vm175_vm0 = vcmask 15360  }
   0xd   :  { %62 = vperm.xlu0 %191, %v58_v2   ;;  %75 = vperm.xlu1 %193, %v58_v2   ;;  %v105_v7 = vld [vmem:[#allocation2 + $0x58] sm:$0xff]  ;;  %v104_v10 = vld [vmem:[#allocation2 + $0x50] sm:$0xff]  ;;  %v103_v11 = vld [vmem:[#allocation2 + $0x48] sm:$0xff] }
   0xe   :  { %114 = vmatpush.msra.mxu0 %v109_v3  ;;  %v102_v12 = vld [vmem:[#allocation2 + $0x40] sm:$0xff]  ;;  %v101_v13 = vld [vmem:[#allocation2 + $0x38] sm:$0xff]  ;;  %v100_v14 = vld [vmem:[#allocation2 + $0x30] sm:$0xff] }
   0xf   :  { %v99_v15 = vld [vmem:[#allocation2 + $0x28] sm:$0xff]  ;;  %v98_v16 = vld [vmem:[#allocation2 + $0x20] sm:$0xff]  ;;  %v97_v17 = vld [vmem:[#allocation2 + $0x18] sm:$0xff] }
  0x10   :  { %115 = vmatpush.msra.mxu0 %v108_v4  ;;  %v96_v18 = vld [vmem:[#allocation2 + $0x10] sm:$0xff]  ;;  %v95_v19 = vld [vmem:[#allocation2 + $0x8] sm:$0xff]  ;;  %v94_v20 = vld [vmem:[#allocation2] sm:$0xff] }
  0x11   :  { %v150_v21 = vld [vmem:[#allocation4 + $0x78] sm:$0xff]  ;;  %v149_v22 = vld [vmem:[#allocation4 + $0x70] sm:$0xff]  ;;  %v148_v23 = vld [vmem:[#allocation4 + $0x68] sm:$0xff] }
  0x12   :  { %116 = vmatpush.msra.mxu0 %v107_v5  ;;  %155 = vmatpush.msra.mxu1 %v150_v21  ;;  %v147_v24 = vld [vmem:[#allocation4 + $0x60] sm:$0xff]  ;;  %v146_v25 = vld [vmem:[#allocation4 + $0x58] sm:$0xff]  ;;  %v145_v26 = vld [vmem:[#allocation4 + $0x50] sm:$0xff] }
  0x13   :  { %v144_v29 = vld [vmem:[#allocation4 + $0x48] sm:$0xff]  ;;  %v143_v30 = vld [vmem:[#allocation4 + $0x40] sm:$0xff]  ;;  %v142_v32 = vld [vmem:[#allocation4 + $0x38] sm:$0xff] }
  0x14   :  { %117 = vmatpush.msra.mxu0 %v106_v6  ;;  %156 = vmatpush.msra.mxu1 %v149_v22  ;;  %v59_v31 = vld [vmem:[%s324_s1] sm:$0xf]  ;;  %v141_v35 = vld [vmem:[#allocation4 + $0x30] sm:$0xff]  ;;  %v140_v38 = vld [vmem:[#allocation4 + $0x28] sm:$0xff] }
  0x15   :  { %192 = vset.pattern.permute.xlu0 %v257_v8  ;;  %194 = vset.pattern.permute.xlu1 %v258_v9  ;;  %v65_v33 = vperm.slane %v59_v31, 0  ;;  %v71_v34 = vperm.slane %v59_v31, 1  ;;  %v78_v36 = vperm.slane %v59_v31, 2  ;;  %v85_v37 = vperm.slane %v59_v31, 3  ;;  %v139_v43 = vld [vmem:[#allocation4 + $0x20] sm:$0xff]  ;;  %v138_v47 = vld [vmem:[#allocation4 + $0x18] sm:$0xff] }
  0x16   :  { %68 = vperm.xlu0 %192, %v58_v2   ;;  %82 = vperm.xlu1 %194, %v58_v2   ;;  %v196_v49 = vld [vmem:[%s325_s2] ss:$0 sm:$0xff]  ;;  %v137_v53 = vld [vmem:[#allocation4 + $0x10] sm:$0xff]  ;;  %v136_v54 = vld [vmem:[#allocation4 + $0x8] sm:$0xff] }
  0x17   :  { %118 = vmatpush.msra.mxu0 %v105_v7  ;;  %157 = vmatpush.msra.mxu1 %v148_v23  ;;  %v135_v55 = vld [vmem:[#allocation4] sm:$0xff] }
  0x18   :  { %v197_v56 = vld [vmem:[%s327_s4] ss:$0 sm:$0xff] }
  0x19   :  { %119 = vmatpush.msra.mxu0 %v104_v10  ;;  %158 = vmatpush.msra.mxu1 %v147_v24  ;;  %v198_v60 = vld [vmem:[%s329_s6] ss:$0 sm:$0xff] }
  0x1b   :  { %120 = vmatpush.msra.mxu0 %v103_v11  ;;  %159 = vmatpush.msra.mxu1 %v146_v25 }
  0x1d   :  { %121 = vmatpush.msra.mxu0 %v102_v12  ;;  %160 = vmatpush.msra.mxu1 %v145_v26 }
  0x1e   :  { %195 = vset.pattern.permute.xlu0 %v258_v9 }
  0x1f   :  { %122 = vmatpush.msra.mxu0 %v101_v13  ;;  %161 = vmatpush.msra.mxu1 %v144_v29 }
  0x21   :  { %123 = vmatpush.msra.mxu0 %v100_v14  ;;  %162 = vmatpush.msra.mxu1 %v143_v30 }
  0x23   :  { %124 = vmatpush.msra.mxu0 %v99_v15  ;;  %163 = vmatpush.msra.mxu1 %v142_v32 }
  0x25   :  { %125 = vmatpush.msra.mxu0 %v98_v16  ;;  %164 = vmatpush.msra.mxu1 %v141_v35 }
  0x27   :  { %126 = vmatpush.msra.mxu0 %v97_v17  ;;  %165 = vmatpush.msra.mxu1 %v140_v38 }
  0x29   :  { %127 = vmatpush.msra.mxu0 %v96_v18  ;;  %166 = vmatpush.msra.mxu1 %v139_v43 }
  0x2b   :  { %128 = vmatpush.msra.mxu0 %v95_v19  ;;  %167 = vmatpush.msra.mxu1 %v138_v47 }
  0x2d   :  { %129 = vmatpush.msra.mxu0 %v94_v20  ;;  %168 = vmatpush.msra.mxu1 %v137_v53 }
  0x2f   :  { %169 = vmatpush.msra.mxu1 %v136_v54 }
  0x31   :  { %170 = vmatpush.msra.mxu1 %v135_v55 }
  0x7f   :  { %v63_v27 = vpop.permute.xlu0 %62  ;;  %v76_v28 = vpop.permute.xlu1 %75 }
  0x80   :  { %v66_v41 = vmul.f32 %v65_v33, %v63_v27  ;;  %v79_v44 = vmul.f32 %v78_v36, %v76_v28 }
  0x88   :  { %v69_v39 = vpop.permute.xlu0 %68  ;;  %v83_v40 = vpop.permute.xlu1 %82 }
  0x89   :  { %v72_v42 = vmul.f32 %v71_v34, %v69_v39  ;;  %v86_v46 = vmul.f32 %v85_v37, %v83_v40 }
  0x8b   :  { %v73_v45 = vadd.f32 %v72_v42, %v66_v41 }
  0x8d   :  { %v80_v48 = vadd.f32 %v79_v44, %v73_v45 }
  0x8f   :  { %v87_v50 = vadd.f32 %v86_v46, %v80_v48 }
  0x91   :  { %v92_v51 = vadd.f32 %v196_v49, %v87_v50 }
  0x93   :  { %v93_v52 = vmax.f32 %v92_v51, 0.0 }
  0x95   :  { %130 = vmatmul.f32.vlgmr.msra.gmra.mxu0 %v93_v52 }
 0x112   :  { %v131_v57 = vpop.f32.mrf.mxu0 }
 0x113   :  { %v132_v58 = vadd.f32 %v197_v56, %v131_v57 }
 0x115   :  { %v134_v59 = vmax.f32 %v132_v58, 0.0 }
 0x117   :  { %171 = vmatmul.f32.vlgmr.msra.gmra.mxu1 %v134_v59 }
 0x194   :  { %v172_v61 = vpop.f32.mrf.mxu1 }
 0x195   :  { %v173_v62 = vadd.f32 %v198_v60, %v172_v61 }
 0x197   :  { %176 = vst.msk [vmem:[%s330_s7] sm:$0xff] %vm175_vm0, %v173_v62 }
 0x198   :  { %181 = vsyncpa [#allocation3], 1 }
 0x199   :  { %182 = vsyncpa [#allocation5], 1 }

</bundles_post_ra>
